<compile_context>
chip_gen: v7x
topology: tpu7x:2x2x1
jax: 0.10.0
libtpu: 0.0.40
codegen_flags: <defaults>
</compile_context>

<pallas_src>
import jax
import jax.numpy as jnp
from jax.experimental import pallas as pl
from jax.experimental.pallas import tpu as pltpu

EPS = 1e-5


def _round_up(x, m):
    return ((x + m - 1) // m) * m


def _make_kernel(n_tiles):
    """Build the fused kernel; n_tiles is the trace-time column-split factor."""

    def kernel(x_ref, w_ref, fb_ref, o_ref):
        # x_ref : (TM, D)  row tile (residual source, full feature dim)
        # w_ref : (D, TN)  gamma-scaled W^T column block
        # fb_ref: (1, TN)  fused bias (= beta @ W^T + b) column block
        # o_ref : (TM, TN) output block
        xf = x_ref[...].astype(jnp.float32)

        # One-pass LayerNorm statistics in f32 (biased variance, torch default).
        mean = jnp.mean(xf, axis=-1, keepdims=True)
        msq = jnp.mean(xf * xf, axis=-1, keepdims=True)
        var = msq - mean * mean
        inv = jax.lax.rsqrt(var + EPS)
        xn = (xf - mean) * inv            # gamma folded into w_ref, beta into fb_ref

        # fn = Linear(dim, dim): MXU in the weight's dtype, f32 accumulation.
        y = jnp.dot(xn.astype(w_ref.dtype), w_ref[...],
                    preferred_element_type=jnp.float32)
        y = y + fb_ref[...].astype(jnp.float32)

        # Residual add: re-read x_ref (short live range across the dot).
        if n_tiles == 1:
            resid = x_ref[...].astype(jnp.float32)
        else:
            tn = o_ref.shape[-1]          # multiple of 128 by construction
            start = pl.multiple_of(pl.program_id(1) * tn, tn)
            resid = x_ref[:, pl.ds(start, tn)].astype(jnp.float32)

        o_ref[...] = (y + resid).astype(o_ref.dtype)

    return kernel


def prenorm_residual(x, gamma, beta, w_t, w_bias, *, tile_rows=512,
                     mxu_dtype=jnp.bfloat16, donate_input=False):
    """Fused PreNormResidual with fn = Linear(dim, dim).

    x: (B, N, D). gamma/beta/w_bias: (D,). w_t: (D, D) = PyTorch weight.T.
    """
    B, N, D = x.shape
    rows = B * N
    x_bytes = jnp.dtype(x.dtype).itemsize
    w_bytes = jnp.dtype(mxu_dtype).itemsize

    # Fold the LayerNorm affine through the linear (exact):
    #   (xhat*gamma + beta) @ W^T + b == xhat @ (gamma[:,None]*W^T) + (beta@W^T + b)
    w_eff = (gamma.astype(jnp.float32)[:, None]
             * w_t.astype(jnp.float32)).astype(mxu_dtype)
    fused_bias = (beta.astype(jnp.float32) @ w_t.astype(jnp.float32)
                  + w_bias.astype(jnp.float32)).reshape(1, D)

    # Row tile: sublane-aligned (16 covers f32 and bf16 packing), big enough to
    # amortize per-step pipeline overhead, small enough that grid >= 2 whenever
    # rows allow so v7x's two TensorCores both get work.
    min_tile = 16
    tile = max(min_tile, min(_round_up(tile_rows, min_tile),
                             _round_up(pl.cdiv(rows, 2), min_tile)))
    row_blocks = pl.cdiv(rows, tile)      # ragged last block: writes are masked

    # Per-generation VMEM budget with headroom for compiler scratch/semaphores.
    try:
        vmem_cap = getattr(pltpu.get_tpu_info(), "vmem_capacity_bytes", None)
    except Exception:                      # not on TPU / query unavailable
        vmem_cap = None
    if not vmem_cap:
        vmem_cap = 64 * 1024 * 1024        # conservative fallback (v7x physical)
    vmem_budget = min(vmem_cap - 16 * 1024 * 1024, (vmem_cap * 7) // 8)
    vmem_budget = max(vmem_budget, 32 * 1024 * 1024)

    def vmem_need(tn, n_tiles):
        w_bufs = 1 if n_tiles == 1 else 2  # single-buffered only when resident
        return (2 * tile * D * x_bytes     # x tiles (double-buffered)
                + 2 * tile * tn * x_bytes  # out tiles (double-buffered)
                + w_bufs * D * tn * w_bytes
                + w_bufs * tn * 4          # fused bias
                + 3 * tile * D * 4)        # f32 intermediates headroom

    # Column-split the weight (second grid axis) when the resident weight plus
    # streamed tiles would blow the per-generation VMEM budget (v7x, large D).
    n_tiles = 1
    if D % 128 == 0:
        while ((3 * vmem_need(D // n_tiles, n_tiles)) // 2 > vmem_budget
               and D % (2 * n_tiles) == 0
               and (D // (2 * n_tiles)) % 128 == 0):
            n_tiles *= 2
    tn = D // n_tiles

    need = vmem_need(tn, n_tiles)
    vmem_limit = int(min(max((3 * need) // 2, 32 * 1024 * 1024), vmem_budget))

    def const_or_stream_spec(shape, index_map):
        # Grid-invariant operands (n_tiles == 1): single-buffer to halve their
        # VMEM footprint. When column-split, they stream per j -> keep default
        # double-buffering so the DMA stays hidden.
        if n_tiles == 1:
            try:
                return pl.BlockSpec(shape, index_map,
                                    pipeline_mode=pl.Buffered(1))
            except TypeError:              # older jax without pipeline_mode
                pass
        return pl.BlockSpec(shape, index_map)

    x2 = x.reshape(rows, D)                # collapse is free; no pad copy

    cost = pl.CostEstimate(
        flops=2 * rows * D * D,
        transcendentals=rows,              # one rsqrt per row
        bytes_accessed=2 * rows * D * x_bytes + D * D * w_bytes + (D + 1) * 4,
    )

    extra = {}
    if donate_input:
        # Output has identical shape/dtype to x2 (no padding temp), so the
        # alias really targets the caller's buffer now.
        extra["input_output_aliases"] = {0: 0}

    out = pl.pallas_call(
        _make_kernel(n_tiles),
        out_shape=jax.ShapeDtypeStruct((rows, D), x.dtype),
        grid_spec=pltpu.PrefetchScalarGridSpec(
            num_scalar_prefetch=0,
            grid=(row_blocks, n_tiles),
            in_specs=[
                pl.BlockSpec((tile, D), lambda i, j: (i, 0)),        # x rows
                const_or_stream_spec((D, tn), lambda i, j: (0, j)),  # W^T cols
                const_or_stream_spec((1, tn), lambda i, j: (0, j)),  # fused bias
            ],
            out_specs=pl.BlockSpec((tile, tn), lambda i, j: (i, j)),
        ),
        compiler_params=pltpu.CompilerParams(
            dimension_semantics=("parallel", "arbitrary"),
            vmem_limit_bytes=vmem_limit,
        ),
        cost_estimate=cost,
        **extra,
    )(x2, w_eff, fused_bias)

    return out.reshape(B, N, D)


def reference(x, gamma, beta, w_t, w_bias):
    xf = x.astype(jnp.float32)
    mean = jnp.mean(xf, axis=-1, keepdims=True)
    var = jnp.mean((xf - mean) ** 2, axis=-1, keepdims=True)
    xn = (xf - mean) * jax.lax.rsqrt(var + EPS) * gamma + beta
    y = xn @ w_t + w_bias
    return (y + xf).astype(x.dtype)


if __name__ == "__main__":
    # TODO(synk): PreNormResidual is generic over `fn`; only fn = Linear(dim, dim)
    # is fused here — arbitrary callables cannot be fused generically.
    B, N, D = 2, 8, 32
    key = jax.random.PRNGKey(0)
    kx, kg, kb, kw, kwb = jax.random.split(key, 5)

    x = jax.random.normal(kx, (B, N, D), dtype=jnp.float32)
    gamma = 1.0 + 0.01 * jax.random.normal(kg, (D,), dtype=jnp.float32)
    beta = 0.01 * jax.random.normal(kb, (D,), dtype=jnp.float32)
    w = 0.1 * jax.random.normal(kw, (D, D), dtype=jnp.float32)   # PyTorch (out, in)
    w_bias = 0.01 * jax.random.normal(kwb, (D,), dtype=jnp.float32)
    w_t = w.T   # kernel computes xn @ W.T like nn.Linear

    ref = reference(x, gamma, beta, w_t, w_bias)

    # f32 MXU path: tight numerical check against the f32 reference.
    out_f32 = jax.block_until_ready(
        prenorm_residual(x, gamma, beta, w_t, w_bias, mxu_dtype=jnp.float32))
    assert out_f32.shape == (B, N, D)
    assert jnp.allclose(out_f32, ref, atol=1e-4, rtol=1e-4), "f32 path mismatch"

    # Default perf path: bf16 weight/activation into the MXU, f32 accumulate.
    out_bf16 = jax.block_until_ready(
        prenorm_residual(x, gamma, beta, w_t, w_bias))
    assert out_bf16.shape == (B, N, D)
    assert jnp.allclose(out_bf16, ref, atol=3e-2, rtol=3e-2), "bf16 path mismatch"

    print("KERNEL_OK")
</pallas_src>

<mosaic_0001>
module attributes {stable_mosaic.version = 11 : i64} {
  func.func @kernel(%arg0: i32, %arg1: i32, %arg2: memref<16x32xf32, #tpu.memory_space<vmem>>, %arg3: memref<32x32xf32, #tpu.memory_space<vmem>>, %arg4: memref<1x32xf32, #tpu.memory_space<vmem>>, %arg5: memref<16x32xf32, #tpu.memory_space<vmem>>) attributes {dimension_semantics = [#tpu.dimension_semantics<parallel>, #tpu.dimension_semantics<arbitrary>], iteration_bounds = array<i64: 1, 1>, scalar_prefetch = 0 : i64, scratch_operands = 0 : i64, tpu.core_type = #tpu.core_type<tc>, window_params = [{transform_indices = @transform_0, window_bounds = array<i64: 16, 32>}, {pipeline_mode = #tpu.pipeline_mode<synchronous>, transform_indices = @transform_1, window_bounds = array<i64: 32, 32>}, {pipeline_mode = #tpu.pipeline_mode<synchronous>, transform_indices = @transform_2, window_bounds = array<i64: 1, 32>}, {transform_indices = @transform_3, window_bounds = array<i64: 16, 32>}]} {
    %c0 = arith.constant 0 : index
    %c0_0 = arith.constant 0 : index
    %0 = vector.load %arg2[%c0, %c0_0] : memref<16x32xf32, #tpu.memory_space<vmem>>, vector<16x32xf32>
    %cst = arith.constant dense<0.000000e+00> : vector<16xf32>
    %1 = vector.multi_reduction <add>, %0, %cst [1] : vector<16x32xf32> to vector<16xf32>
    %2 = vector.shape_cast %1 : vector<16xf32> to vector<16x1xf32>
    %cst_1 = arith.constant 3.200000e+01 : f32
    %3 = vector.broadcast %cst_1 : f32 to vector<16x1xf32>
    %4 = arith.divf %2, %3 : vector<16x1xf32>
    %5 = arith.mulf %0, %0 : vector<16x32xf32>
    %cst_2 = arith.constant dense<0.000000e+00> : vector<16xf32>
    %6 = vector.multi_reduction <add>, %5, %cst_2 [1] : vector<16x32xf32> to vector<16xf32>
    %7 = vector.shape_cast %6 : vector<16xf32> to vector<16x1xf32>
    %cst_3 = arith.constant 3.200000e+01 : f32
    %8 = vector.broadcast %cst_3 : f32 to vector<16x1xf32>
    %9 = arith.divf %7, %8 : vector<16x1xf32>
    %10 = arith.mulf %4, %4 : vector<16x1xf32>
    %11 = arith.subf %9, %10 : vector<16x1xf32>
    %cst_4 = arith.constant 9.99999974E-6 : f32
    %12 = vector.broadcast %cst_4 : f32 to vector<16x1xf32>
    %13 = arith.addf %11, %12 : vector<16x1xf32>
    %14 = math.rsqrt %13 : vector<16x1xf32>
    %15 = vector.broadcast %4 : vector<16x1xf32> to vector<16x32xf32>
    %16 = arith.subf %0, %15 : vector<16x32xf32>
    %17 = vector.broadcast %14 : vector<16x1xf32> to vector<16x32xf32>
    %18 = arith.mulf %16, %17 : vector<16x32xf32>
    %c0_5 = arith.constant 0 : index
    %c0_6 = arith.constant 0 : index
    %19 = vector.load %arg3[%c0_5, %c0_6] : memref<32x32xf32, #tpu.memory_space<vmem>>, vector<32x32xf32>
    %cst_7 = arith.constant dense<0.000000e+00> : vector<16x32xf32>
    %20 = tpu.matmul %18, %19, %cst_7 {dimension_numbers = #tpu.dot_dimension_numbers<[1], [0], [0], [1], [0, 0, 1, 1], [], []>} : vector<16x32xf32>, vector<32x32xf32>, vector<16x32xf32> -> vector<16x32xf32>
    %c0_8 = arith.constant 0 : index
    %c0_9 = arith.constant 0 : index
    %21 = vector.load %arg4[%c0_8, %c0_9] : memref<1x32xf32, #tpu.memory_space<vmem>>, vector<1x32xf32>
    %22 = vector.broadcast %21 : vector<1x32xf32> to vector<16x32xf32>
    %23 = arith.addf %20, %22 : vector<16x32xf32>
    %c0_10 = arith.constant 0 : index
    %c0_11 = arith.constant 0 : index
    %24 = vector.load %arg2[%c0_10, %c0_11] : memref<16x32xf32, #tpu.memory_space<vmem>>, vector<16x32xf32>
    %25 = arith.addf %23, %24 : vector<16x32xf32>
    %c0_12 = arith.constant 0 : index
    %c0_13 = arith.constant 0 : index
    %26 = vector.load %arg5[%c0_12, %c0_13] : memref<16x32xf32, #tpu.memory_space<vmem>>, vector<16x32xf32>
    tpu.vector_store %arg5[%c0_12, %c0_13], %25 {strides = array<i32>} : memref<16x32xf32, #tpu.memory_space<vmem>>, vector<16x32xf32>,
    return
  }
  func.func @transform_0(%arg0: i32, %arg1: i32) -> (i32, i32) {
    %c0_i32 = arith.constant 0 : i32
    %c0_i32_0 = arith.constant 0 : i32
    return %arg0, %c0_i32 : i32, i32
  }
  func.func @transform_1(%arg0: i32, %arg1: i32) -> (i32, i32) {
    %c0_i32 = arith.constant 0 : i32
    %c0_i32_0 = arith.constant 0 : i32
    return %c0_i32, %arg1 : i32, i32
  }
  func.func @transform_2(%arg0: i32, %arg1: i32) -> (i32, i32) {
    %c0_i32 = arith.constant 0 : i32
    %c0_i32_0 = arith.constant 0 : i32
    return %c0_i32, %arg1 : i32, i32
  }
  func.func @transform_3(%arg0: i32, %arg1: i32) -> (i32, i32) {
    %c0_i32 = arith.constant 0 : i32
    return %arg0, %arg1 : i32, i32
  }
}

</mosaic_0001>

<bundles_post_ra>
// kernel: tpu_custom_call.1
= control target key start
LH: loop header
LB: loop body
LE: loop exit
PB: predicated region body
PF: predicated region fallthrough
CT: control target
= control target key end

     0   :  { %8 = vsyncpa [#allocation3], 0  ;;  %s381_s0 = inlined_call_operand.hbm [shape: f32[16,32], index: 0, kind: input, shape index: {}]   ;;  %s382_s1 = inlined_call_operand.hbm [shape: f32[32,32], index: 1, kind: input, shape index: {}]   ;;  %s383_s2 = inlined_call_operand.vmem [shape: f32[1,32], index: 2, kind: input, shape index: {}]   ;;  %s384_s3 = inlined_call_operand.hbm [shape: f32[16,32], index: 3, kind: output, shape index: {}]  }
   0x1   :  { %9 = vsyncpa [#allocation6], 0 }
   0x2   :  { %10 = vsyncpa [#allocation4], 0  ;;  %s300_s12 = smov [#allocation2]   ;;  %s228_s16 = scalar_lea.hbm %s381_s0, 256 }
   0x3   :  { %s16_s13 = sshll.u32 %s300_s12, 4  ;;  %p229_p0 = scmp.ne.s32.totalorder %s381_s0, %s228_s16  ;;  %s17_s13 = int_to_ptr.vmem [resolvable:$true] %s16_s13 }
   0x4   :  { %p232_p1 = scmp.lt.u32.totalorder %s228_s16, %s381_s0 }
   0x6   :  { %p234_p2 = pnand %p232_p1, %p229_p0 }
   0x8   :  { %237 = shalt.err (!%p234_p2)
}
   0x9   :  { %s238_s21 = scalar_lea.vmem %s17_s13, 256  ;;  %p243_p4 = scmp.lt.s32.totalorder %s17_s13, %s17_s13 }
   0xa   :  { %p239_p3 = scmp.ne.s32.totalorder %s17_s13, %s238_s21  ;;  %p244_p5 = scmp.lt.s32.totalorder %s238_s21, %s238_s21 }
   0xc   :  { %p245_p6 = por %p244_p5, %p243_p4 }
   0xe   :  { %p246_p7 = pnand %p245_p6, %p239_p3 }
  0x10   :  { %249 = shalt.err (!%p246_p7)
}
  0x11   :  { %s301_s22 = smov 128   ;;  %s302_s23 = smov 8  }
  0x12   :  { %22 = dma.hbm_to_vmem [thread:$0]  %s381_s0, 256, %s17_s13, [#allocation3], %s301_s22, %s301_s22, %s302_s23  }
  0x13   :  { %s303_s26 = smov [#allocation5]   ;;  %s250_s30 = scalar_lea.hbm %s382_s1, 512 }
  0x14   :  { %s28_s27 = sshll.u32 %s303_s26, 4  ;;  %p251_p8 = scmp.ne.s32.totalorder %s382_s1, %s250_s30  ;;  %s29_s27 = int_to_ptr.vmem [resolvable:$true] %s28_s27 }
  0x15   :  { %p254_p9 = scmp.lt.u32.totalorder %s250_s30, %s382_s1 }
  0x17   :  { %p256_p10 = pnand %p254_p9, %p251_p8 }
  0x19   :  { %259 = shalt.err (!%p256_p10)
}
  0x1a   :  { %s260_s8 = scalar_lea.vmem %s29_s27, 512  ;;  %p265_p12 = scmp.lt.s32.totalorder %s29_s27, %s29_s27 }
  0x1b   :  { %p261_p11 = scmp.ne.s32.totalorder %s29_s27, %s260_s8  ;;  %p266_p13 = scmp.lt.s32.totalorder %s260_s8, %s260_s8 }
  0x1d   :  { %p267_p0 = por %p266_p13, %p265_p12 }
  0x1f   :  { %p268_p1 = pnand %p267_p0, %p261_p11 }
  0x21   :  { %271 = shalt.err (!%p268_p1)
}
  0x22   :  { %34 = dma.hbm_to_vmem [thread:$0]  %s382_s1, 512, %s29_s27, [#allocation6], %s301_s22, %s301_s22, %s302_s23  }
  0x23   :  { %294 = dma.done.wait [#allocation3], 256  }
  0x24   :  { %295 = vsyncadd [#allocation3], 4294967040 }
  0x25   :  { %296 = dma.done.wait [#allocation6], 512  }
  0x26   :  { %297 = vsyncadd [#allocation6], 4294966784  ;;  %vm45_vm0 = vcmask 261120   ;;  %v43_v0 = vld [vmem:[#allocation2] sm:$0xff]  ;;  %v44_v1 = vld [vmem:[#allocation2 + $0x8] sm:$0xff]  ;;  %s304_s11 = smov [#allocation7]  }
  0x27   :  { %v46_v2 = vsel %vm45_vm0, %v43_v0, 0.0  ;;  %v55_v3 = vmul.f32 %v43_v0, %v43_v0  ;;  %v56_v4 = vmul.f32 %v44_v1, %v44_v1  ;;  %v49_v6 = vsel %vm45_vm0, %v44_v1, 0.0  ;;  %v77_v8 = vld [vmem:[#allocation5] sm:$0xff]  ;;  %v78_v9 = vld [vmem:[#allocation5 + $0x8] sm:$0xff]  ;;  %v79_v10 = vld [vmem:[#allocation5 + $0x10] sm:$0xff]  ;;  %s178_s12 = sshll.u32 %s304_s11, 4  ;;  %s179_s12 = int_to_ptr.vmem [resolvable:$true] %s178_s12 }
  0x28   :  { %47 = vadd.xlane.f32.xlu0 %v46_v2  ;;  %v211_v11 = vpack.c.bf16 %v78_v9, %v77_v8  ;;  %v80_v12 = vld [vmem:[#allocation5 + $0x18] sm:$0xff]  ;;  %v191_v34 = vld [vmem:[%s383_s2] ss:$0 sm:$0xff]  ;;  %s272_s13 = scalar_lea.vmem %s179_s12, 256  ;;  %p277_p3 = scmp.lt.s32.totalorder %s179_s12, %s179_s12 }
  0x29   :  { %v57_v5 = vsel %vm45_vm0, %v55_v3, 0.0  ;;  %v60_v7 = vsel %vm45_vm0, %v56_v4, 0.0  ;;  %v215_v13 = vpack.c.bf16 %v80_v12, %v79_v10  ;;  %p273_p2 = scmp.ne.s32.totalorder %s179_s12, %s272_s13  ;;  %p278_p4 = scmp.lt.s32.totalorder %s272_s13, %s272_s13 }
  0x2a   :  { %58 = vadd.xlane.f32.xlu1 %v57_v5  ;;  %212 = vmatprep.subr.bf16.mxu0 %v211_v11 }
  0x2b   :  { %214 = vmatpush3.bf16.msra.mxu0 %v211_v11  ;;  %p279_p5 = por %p278_p4, %p277_p3 }
  0x2c   :  { %50 = vadd.xlane.f32.xlu0 %v49_v6  ;;  %216 = vmatprep.subr.bf16.mxu0 %v215_v13 }
  0x2d   :  { %p280_p6 = pnand %p279_p5, %p273_p2 }
  0x2e   :  { %61 = vadd.xlane.f32.xlu1 %v60_v7 }
  0x2f   :  { %218 = vmatpush3.bf16.msra.mxu0 %v215_v13 }
  0xb5   :  { %v48_v14 = vpop.xlane.xlu0 %47 }
  0xb6   :  { %v53_v15 = vmul.f32 0.03125, %v48_v14 }
  0xb7   :  { %v59_v16 = vpop.xlane.xlu1 %58 }
  0xb8   :  { %v65_v17 = vmul.f32 %v53_v15, %v53_v15  ;;  %v63_v18 = vmul.f32 0.03125, %v59_v16  ;;  %v73_v28 = vsub.f32 %v43_v0, %v53_v15 }
  0xb9   :  { %v51_v19 = vpop.xlane.xlu0 %50 }
  0xba   :  { %v67_v20 = vsub.f32 %v63_v18, %v65_v17  ;;  %v54_v21 = vmul.f32 0.03125, %v51_v19 }
  0xbb   :  { %v62_v22 = vpop.xlane.xlu1 %61 }
  0xbc   :  { %v69_v23 = vadd.f32 1e-05, %v67_v20  ;;  %v66_v24 = vmul.f32 %v54_v21, %v54_v21  ;;  %v64_v25 = vmul.f32 0.03125, %v62_v22  ;;  %v74_v31 = vsub.f32 %v44_v1, %v54_v21 }
  0xbe   :  { %224 = vrsqrt.f32 %v69_v23  ;;  %v68_v26 = vsub.f32 %v64_v25, %v66_v24 }
  0xc0   :  { %v70_v27 = vadd.f32 1e-05, %v68_v26 }
  0xc2   :  { %226 = vrsqrt.f32 %v70_v27 }
  0xc8   :  { %v225_v29 = vpop.eup %224 }
  0xc9   :  { %v75_v30 = vmul.f32 %v225_v29, %v73_v28 }
  0xcb   :  { %208 = vmatprep.mubr.msk.f32.mxu0 %vm45_vm0, %v75_v30 }
  0xcc   :  { %v227_v32 = vpop.eup %226 }
  0xcd   :  { %v76_v33 = vmul.f32 %v227_v32, %v74_v31 }
  0xcf   :  { %209 = vmatmul.mubr.msk.f32.vlgmr.msra.gmra.mrb[0].mxu0 %vm45_vm0, %v76_v33 }
 0x1a2   :  { %v210_v35 = vpop.f32.mrb[0].mxu0 }
 0x1a3   :  { %v166_v36 = vadd.f32 %v210_v35, %v191_v34  ;;  %v160_v37 = vpop.f32.mrb[1].mxu0 }
 0x1a4   :  { %v161_v38 = vadd.f32 %v191_v34, %v160_v37 }
 0x1a5   :  { %v170_v39 = vadd.f32 %v166_v36, %v44_v1 }
 0x1a6   :  { %v169_v40 = vadd.f32 %v161_v38, %v43_v0 }
 0x1a7   :  { %172 = vst.msk [vmem:[#allocation7 + $0x8] sm:$0xff] %vm45_vm0, %v170_v39 }
 0x1a8   :  { %171 = vst.msk [vmem:[#allocation7] sm:$0xff] %vm45_vm0, %v169_v40 }
 0x1a9   :  { %283 = shalt.err (!%p280_p6)
}
 0x1aa   :  { %s284_s15 = scalar_lea.hbm %s384_s3, 256 }
 0x1ab   :  { %p285_p7 = scmp.ne.s32.totalorder %s384_s3, %s284_s15  ;;  %p288_p8 = scmp.lt.u32.totalorder %s284_s15, %s384_s3 }
 0x1ad   :  { %p290_p9 = pnand %p288_p8, %p285_p7 }
 0x1af   :  { %293 = shalt.err (!%p290_p9)
}
 0x1b0   :  { %184 = dma.vmem_to_hbm [thread:$0]  %s179_s12, 256, %s384_s3, [#allocation4], %s301_s22, %s301_s22, %s302_s23  }
 0x1b1   :  { %298 = dma.done.wait [#allocation4], 256  }
 0x1b2   :  { %299 = vsyncadd [#allocation4], 4294967040 }
 0x1b3   :  { %188 = vsyncpa [#allocation3], 1 }
 0x1b4   :  { %189 = vsyncpa [#allocation6], 1 }
 0x1b5   :  { %190 = vsyncpa [#allocation4], 1 }

</bundles_post_ra>
